<compile_context>
chip_gen: v6e
topology: v6e:2x2x1
jax: 0.10.0
libtpu: 0.0.40
codegen_flags: <defaults>
</compile_context>

<pallas_src>
import jax
import jax.numpy as jnp
from jax.experimental import pallas as pl
from jax.experimental.pallas import tpu as pltpu


def _point_gen_kernel(x_ref, w_ref, o_ref):
    # x_ref: (2, TN) VMEM, lane-dense.  w_ref: (2, 2) SMEM.  o_ref: (2, TN) VMEM.
    x0 = x_ref[0:1, :]          # (1, TN)
    x1 = x_ref[1:2, :]          # (1, TN)

    w00 = w_ref[0, 0]
    w01 = w_ref[0, 1]
    w10 = w_ref[1, 0]
    w11 = w_ref[1, 1]

    # out[:, j] of the original (N, 2) result  ==  row j here (lane-dense).
    o_ref[0:1, :] = x0 * w00 + x1 * w10
    o_ref[1:2, :] = x0 * w01 + x1 * w11


def point_generator_layer(x, weight_1, *, tn=32 * 1024):
    """x: (N, 2) float32, weight_1: (2, 2) float32 -> (N, 2) float32."""
    N, K = x.shape
    Kw, M = weight_1.shape
    assert K == Kw == 2 and M == 2, "pointGeneratorLayer expects (N,2) x (2,2)"

    # Tile size: multiple of 128 lanes, no bigger than needed.
    tn = max(128, (tn // 128) * 128)
    tile = min(tn, pl.cdiv(N, 128) * 128)
    n_pad = pl.cdiv(N, tile) * tile

    # Lane-dense layout: (K, N), zero-padded along N to a multiple of `tile`.
    x_t = x.T
    if n_pad != N:
        x_t = jnp.pad(x_t, ((0, 0), (0, n_pad - N)))

    grid = (n_pad // tile,)

    out_t = pl.pallas_call(
        _point_gen_kernel,
        out_shape=jax.ShapeDtypeStruct((M, n_pad), x.dtype),
        grid_spec=pltpu.PrefetchScalarGridSpec(
            num_scalar_prefetch=0,
            grid=grid,
            in_specs=[
                # x: lane-dense (2, TN) blocks, double-buffered by Pallas.
                pl.BlockSpec((K, tile), lambda i: (0, i)),
                # weight: tiny (2, 2), keep it in SMEM, read as scalars.
                pl.BlockSpec(memory_space=pltpu.MemorySpace.SMEM),
            ],
            out_specs=pl.BlockSpec((M, tile), lambda i: (0, i)),
        ),
        compiler_params=pltpu.CompilerParams(
            dimension_semantics=("parallel",),
        ),
    )(x_t, weight_1)

    # Drop padding, back to torch.mm layout (N, 2).
    return out_t[:, :N].T


if __name__ == "__main__":
    key = jax.random.PRNGKey(0)
    kx, kw = jax.random.split(key)

    # Module implies x has 2 columns (weight_1 is (2, 2)); small batch N=8.
    N, K, M = 8, 2, 2
    x = jax.random.normal(kx, (N, K), dtype=jnp.float32)

    # nn.Parameter(torch.zeros(2, 2)) -> shape (2, 2). Deterministic non-zero
    # synthetic init so the product is actually exercised.
    weight_1 = jax.random.normal(kw, (K, M), dtype=jnp.float32) * 0.1

    out = point_generator_layer(x, weight_1)
    out = jax.block_until_ready(out)

    # Verify against plain-JAX reference of torch.mm semantics.
    ref = x @ weight_1
    assert out.shape == (N, M)
    assert jnp.allclose(out, ref, atol=1e-5, rtol=1e-5), "mismatch vs reference"

    print("KERNEL_OK")
</pallas_src>

<mosaic_0001>
module attributes {stable_mosaic.version = 11 : i64} {
  func.func @_point_gen_kernel(%arg0: i32, %arg1: memref<2x128xf32, #tpu.memory_space<vmem>>, %arg2: memref<2x2xf32, #tpu.memory_space<smem>>, %arg3: memref<2x128xf32, #tpu.memory_space<vmem>>) attributes {dimension_semantics = [#tpu.dimension_semantics<parallel>], iteration_bounds = array<i64: 1>, scalar_prefetch = 0 : i64, scratch_operands = 0 : i64, tpu.core_type = #tpu.core_type<tc>, window_params = [{transform_indices = @transform_0, window_bounds = array<i64: 2, 128>}, {transform_indices = @transform_1, window_bounds = array<i64: 2, 2>}, {transform_indices = @transform_2, window_bounds = array<i64: 2, 128>}]} {
    %c0 = arith.constant 0 : index
    %c0_0 = arith.constant 0 : index
    %0 = vector.load %arg1[%c0, %c0_0] : memref<2x128xf32, #tpu.memory_space<vmem>>, vector<1x128xf32>
    %c1 = arith.constant 1 : index
    %c0_1 = arith.constant 0 : index
    %1 = vector.load %arg1[%c1, %c0_1] : memref<2x128xf32, #tpu.memory_space<vmem>>, vector<1x128xf32>
    %c0_2 = arith.constant 0 : index
    %c0_3 = arith.constant 0 : index
    %2 = memref.load %arg2[%c0_2, %c0_3] : memref<2x2xf32, #tpu.memory_space<smem>>
    %c0_4 = arith.constant 0 : index
    %c1_5 = arith.constant 1 : index
    %3 = memref.load %arg2[%c0_4, %c1_5] : memref<2x2xf32, #tpu.memory_space<smem>>
    %c1_6 = arith.constant 1 : index
    %c0_7 = arith.constant 0 : index
    %4 = memref.load %arg2[%c1_6, %c0_7] : memref<2x2xf32, #tpu.memory_space<smem>>
    %c1_8 = arith.constant 1 : index
    %c1_9 = arith.constant 1 : index
    %5 = memref.load %arg2[%c1_8, %c1_9] : memref<2x2xf32, #tpu.memory_space<smem>>
    %6 = vector.broadcast %2 : f32 to vector<1x128xf32>
    %7 = arith.mulf %0, %6 : vector<1x128xf32>
    %8 = vector.broadcast %4 : f32 to vector<1x128xf32>
    %9 = arith.mulf %1, %8 : vector<1x128xf32>
    %10 = arith.addf %7, %9 : vector<1x128xf32>
    %c0_10 = arith.constant 0 : index
    %c0_11 = arith.constant 0 : index
    %11 = vector.load %arg3[%c0_10, %c0_11] : memref<2x128xf32, #tpu.memory_space<vmem>>, vector<1x128xf32>
    tpu.vector_store %arg3[%c0_10, %c0_11], %10 {strides = array<i32>} : memref<2x128xf32, #tpu.memory_space<vmem>>, vector<1x128xf32>,
    %12 = vector.broadcast %3 : f32 to vector<1x128xf32>
    %13 = arith.mulf %0, %12 : vector<1x128xf32>
    %14 = vector.broadcast %5 : f32 to vector<1x128xf32>
    %15 = arith.mulf %1, %14 : vector<1x128xf32>
    %16 = arith.addf %13, %15 : vector<1x128xf32>
    %c1_12 = arith.constant 1 : index
    %c0_13 = arith.constant 0 : index
    %17 = vector.load %arg3[%c1_12, %c0_13] : memref<2x128xf32, #tpu.memory_space<vmem>>, vector<1x128xf32>
    tpu.vector_store %arg3[%c1_12, %c0_13], %16 {strides = array<i32>} : memref<2x128xf32, #tpu.memory_space<vmem>>, vector<1x128xf32>,
    return
  }
  func.func @transform_0(%arg0: i32) -> (i32, i32) {
    %c0_i32 = arith.constant 0 : i32
    %c0_i32_0 = arith.constant 0 : i32
    return %c0_i32, %arg0 : i32, i32
  }
  func.func @transform_1(%arg0: i32) -> (i32, i32) {
    %c0_i32 = arith.constant 0 : i32
    %c0_i32_0 = arith.constant 0 : i32
    %c0_i32_1 = arith.constant 0 : i32
    return %c0_i32, %c0_i32_0 : i32, i32
  }
  func.func @transform_2(%arg0: i32) -> (i32, i32) {
    %c0_i32 = arith.constant 0 : i32
    %c0_i32_0 = arith.constant 0 : i32
    return %c0_i32, %arg0 : i32, i32
  }
}

</mosaic_0001>

<bundles_post_ra>
// kernel: tpu_custom_call.1
= control target key start
LH: loop header
LB: loop body
LE: loop exit
PB: predicated region body
PF: predicated region fallthrough
CT: control target
= control target key end

     0   :  { %7 = vsyncpa [#allocation3], 0  ;;  %s156_s0 = inlined_call_operand.hbm [shape: f32[2,128], index: 0, kind: input, shape index: {}]   ;;  %s157_s1 = inlined_call_operand.hbm [shape: f32[2,2], index: 1, kind: input, shape index: {}]   ;;  %s158_s2 = inlined_call_operand.hbm [shape: f32[2,128], index: 2, kind: output, shape index: {}]  }
   0x1   :  { %8 = vsyncpa [#allocation5], 0 }
   0x2   :  { %9 = vsyncpa [#allocation4], 0  ;;  %s129_s9 = smov [#allocation2]  }
   0x3   :  { %s16_s10 = sshll.u32 %s129_s9, 4  ;;  %s17_s10 = int_to_ptr.vmem [resolvable:$true] %s16_s10 }
   0x4   :  { %s83_s11 = scalar_lea.vmem %s17_s10, 32  ;;  %p88_p1 = scmp.lt.s32.totalorder %s17_s10, %s17_s10 }
   0x5   :  { %p84_p0 = scmp.ne.s32.totalorder %s17_s10, %s83_s11  ;;  %p89_p2 = scmp.lt.s32.totalorder %s83_s11, %s83_s11 }
   0x7   :  { %p90_p3 = por %p89_p2, %p88_p1 }
   0x9   :  { %p91_p4 = pnand %p90_p3, %p84_p0 }
   0xb   :  { %94 = shalt.err (!%p91_p4)
}
   0xc   :  { %19 = dma.hbm_to_vmem [thread:$0]  %s156_s0, 32, %s17_s10, [#allocation3]  }
   0xd   :  { %s130_s14 = smov [#allocation6]  }
   0xe   :  { %27 = dma.hbm_to_smem %s157_s1, 32, %s130_s14, [#allocation5]  }
   0xf   :  { %123 = dma.done.wait [#allocation3], 32  }
  0x10   :  { %124 = vsyncadd [#allocation3], 4294967264 }
  0x11   :  { %125 = dma.done.wait [#allocation5], 32  }
  0x12   :  { %126 = vsyncadd [#allocation5], 4294967264 }
  0x13   :  { %34 = sfence }
  0x14   :  { %s37_s17 = sld [smem:[#allocation6]]  ;;  %v35_v0 = vld [vmem:[#allocation2] sm:$0x1]  ;;  %v36_v1 = vld [vmem:[#allocation2 + $0x1] sm:$0x1]  ;;  %s131_s0 = smov [#allocation7]  }
  0x15   :  { %s70_s18 = sld [smem:[#allocation6 + $0x80]]  ;;  %s59_s1 = sshll.u32 %s131_s0, 4  ;;  %s60_s1 = int_to_ptr.vmem [resolvable:$true] %s59_s1 }
  0x16   :  { %s69_s19 = sld [smem:[#allocation6 + $0x1]]  ;;  %s103_s21 = scalar_lea.vmem %s60_s1, 32 }
  0x17   :  { %s71_s20 = sld [smem:[#allocation6 + $0x81]]  ;;  %p104_p5 = scmp.ne.s32.totalorder %s60_s1, %s103_s21 }
  0x18   :  { %p108_p6 = scmp.lt.s32.totalorder %s60_s1, %s60_s1  ;;  %p109_p7 = scmp.lt.s32.totalorder %s103_s21, %s103_s21 }
  0x1a   :  { %v41_v2 = vstv %s37_s17  ;;  %p110_p8 = por %p109_p7, %p108_p6 }
  0x1b   :  { %v42_v3 = vmul.f32 %v41_v2, %v35_v0  ;;  %v43_v4 = vstv %s70_s18 }
  0x1c   :  { %v44_v5 = vmul.f32 %v43_v4, %v36_v1  ;;  %v47_v6 = vstv %s69_s19  ;;  %p111_p9 = pnand %p110_p8, %p104_p5 }
  0x1d   :  { %v48_v7 = vmul.f32 %v47_v6, %v35_v0  ;;  %v49_v8 = vstv %s71_s20 }
  0x1e   :  { %v45_v9 = vadd.f32 %v44_v5, %v42_v3  ;;  %v50_v10 = vmul.f32 %v49_v8, %v36_v1 }
  0x20   :  { %46 = vst [vmem:[#allocation7] sm:$0x1] %v45_v9  ;;  %v51_v11 = vadd.f32 %v50_v10, %v48_v7 }
  0x22   :  { %52 = vst [vmem:[#allocation7 + $0x1] sm:$0x1] %v51_v11 }
  0x23   :  { %114 = shalt.err (!%p111_p9)
}
  0x24   :  { %62 = dma.vmem_to_hbm [thread:$0]  %s60_s1, 32, %s158_s2, [#allocation4]  }
  0x25   :  { %127 = dma.done.wait [#allocation4], 32  }
  0x26   :  { %128 = vsyncadd [#allocation4], 4294967264 }
  0x27   :  { %66 = vsyncpa [#allocation3], 1 }
  0x28   :  { %67 = vsyncpa [#allocation4], 1 }
  0x29   :  { %68 = vsyncpa [#allocation5], 1 }

</bundles_post_ra>
